<compile_context>
chip_gen: v7x
topology: tpu7x:2x2x1
jax: 0.10.0
libtpu: 0.0.40
codegen_flags: <defaults>
</compile_context>

<pallas_src>
import functools

import jax
import jax.numpy as jnp
from jax.experimental import pallas as pl
from jax.experimental.pallas import tpu as pltpu


_LOG_CLAMP = -100.0  # torch.nn.functional.binary_cross_entropy clamps log at -100
_VMEM_LIMIT_BYTES = 48 * 1024 * 1024


def _round_up(a, b):
    return ((a + b - 1) // b) * b


def _cdiv(a, b):
    return (a + b - 1) // b


def _pt_pow(pt, gamma):
    """pt**gamma, avoiding jnp.power (exp/log on EUP) for small integer gammas."""
    g = float(gamma)
    if g == 1.0:
        return pt
    if g == 2.0:
        return pt * pt
    if g == 3.0:
        return pt * pt * pt
    if g == 4.0:
        q = pt * pt
        return q * q
    return jnp.power(pt, jnp.float32(g))


def _lossmap_tile(x_ref, tgt_ref, *, pos_neg_rate, focal_gamma, ignore_index,
                  input_logits):
    """Per-pixel MCE lossmap for one tile: x_ref (C, TN), tgt_ref (1, TN) -> (1, TN) f32."""
    x = x_ref[...].astype(jnp.float32)       # (C, TN)
    tgt = tgt_ref[...]                       # (1, TN) int32
    r = jnp.float32(pos_neg_rate)
    zero = jnp.float32(0.0)

    ch_ids = jax.lax.broadcasted_iota(jnp.int32, x.shape, 0)   # (C, TN)
    is_tgt = ch_ids == tgt                                     # (C, TN) bool

    if input_logits:
        m = jnp.max(x, axis=0, keepdims=True)            # (1, TN)
        shifted = x - m                                   # (C, TN)
        e = jnp.exp(shifted)
        s = jnp.sum(e, axis=0, keepdims=True)             # (1, TN)
        inv_s = 1.0 / s                                   # exact reciprocal, (1, TN) only
        log_s = jnp.log(s)                                # (1, TN)
        p = e * inv_s                                     # softmax probs (C, TN)
        # log p at the target class without materializing a (C, TN) log_softmax.
        g_shift = jnp.sum(jnp.where(is_tgt, shifted, zero), axis=0, keepdims=True)
        log_p_t = jnp.maximum(g_shift - log_s, _LOG_CLAMP)        # (1, TN)
    else:
        p = x
        g_p = jnp.sum(jnp.where(is_tgt, p, zero), axis=0, keepdims=True)
        log_p_t = jnp.maximum(jnp.log(g_p), _LOG_CLAMP)

    log_1mp = jnp.maximum(jnp.log(1.0 - p), _LOG_CLAMP)          # (C, TN)

    if focal_gamma is None or focal_gamma == 0:
        # lossmap = -r*log(p_t) - (1-r) * sum_{c != t} log(1 - p_c)
        sum_log1mp = jnp.sum(log_1mp, axis=0, keepdims=True)                          # (1, TN)
        g_log1mp = jnp.sum(jnp.where(is_tgt, log_1mp, zero), axis=0, keepdims=True)   # (1, TN)
        lossmap = (1.0 - r) * (g_log1mp - sum_log1mp) - r * log_p_t
    else:
        bce = -jnp.where(is_tgt, log_p_t, log_1mp)        # (1,TN) broadcast into (C,TN)
        w = jnp.where(is_tgt, r, 1.0 - r)
        pt = jnp.where(is_tgt, 1.0 - p, p)
        lossmap = jnp.sum(bce * w * _pt_pow(pt, focal_gamma), axis=0, keepdims=True)

    if ignore_index is not None:
        lossmap = jnp.where(tgt == jnp.int32(ignore_index), zero, lossmap)
    return lossmap


def _mce_lossmap_kernel(x_ref, tgt_ref, out_ref, **cfg):
    out_ref[...] = _lossmap_tile(x_ref, tgt_ref, **cfg)


def _mce_sum_kernel(x_ref, tgt_ref, out_ref, *, hw, tile_n, **cfg):
    """Fused-reduction variant: accumulate masked per-lane partial sums into a resident
    (1, tile_n) output block (no full lossmap round-trip through HBM)."""
    b = pl.program_id(0)
    i = pl.program_id(1)

    @pl.when(jnp.logical_and(b == 0, i == 0))
    def _():
        out_ref[...] = jnp.zeros_like(out_ref)

    lossmap = _lossmap_tile(x_ref, tgt_ref, **cfg)                     # (1, TN)
    lane = jax.lax.broadcasted_iota(jnp.int32, lossmap.shape, 1)
    valid = (i * tile_n + lane) < hw                                   # mask ragged edge
    out_ref[...] += jnp.where(valid, lossmap, jnp.float32(0.0))


def _pick_tile_n(B, C, HW, itemsize, focal, max_tile_n, vmem_budget_bytes):
    """Lane-tile sizing: count double-buffered blocks AND live in-kernel f32 temporaries."""
    sub_in = 16 if itemsize < 4 else 8          # bf16 packs 2 rows / sublane
    c_pad_in = _round_up(C, sub_in)
    c_pad_f32 = _round_up(C, 8)
    k_live = 8 if focal else 6                  # live (C, TN) f32 arrays at peak
    bytes_per_lane = (2 * c_pad_in * itemsize   # double-buffered logits block
                      + 2 * 8 * 4               # double-buffered int32 target block (sublane pad)
                      + 2 * 8 * 4               # double-buffered f32 output block
                      + k_live * c_pad_f32 * 4)
    cap = max(128, vmem_budget_bytes // bytes_per_lane)
    cap = (cap // 128) * 128
    max_tile_n = max(128, (int(max_tile_n) // 128) * 128)
    tile_n = max(128, min(cap, max_tile_n, _round_up(HW, 128)))
    # v7x megacore / pipeline depth: keep >= ~8 grid steps when the problem allows it.
    while tile_n > 128 and B * _cdiv(HW, tile_n) < 8:
        tile_n -= 128
    return tile_n


def _prep(logits_nchw, target_bhw, num_classes, focal_gamma, max_tile_n,
          vmem_budget_bytes):
    B, C, H, W = logits_nchw.shape
    if num_classes is not None:
        assert num_classes == C, "num_classes must match the channel dim"
    HW = H * W
    focal = focal_gamma is not None and focal_gamma != 0
    tile_n = _pick_tile_n(B, C, HW, jnp.dtype(logits_nchw.dtype).itemsize, focal,
                          max_tile_n, vmem_budget_bytes)
    num_tiles = _cdiv(HW, tile_n)
    # Free reshapes only (no HBM transpose, no pad): NCHW -> (B, C, HW), target -> (B, 1, HW).
    x = logits_nchw.reshape(B, C, HW)
    t = target_bhw.reshape(B, 1, HW).astype(jnp.int32)
    return x, t, B, C, H, W, HW, tile_n, num_tiles


def multiclass_cross_entropy_loss_pallas(logits_nchw, target_bhw, num_classes=None,
                                         ignore_index=None, pos_neg_rate=0.5,
                                         focal_gamma=None, input_logits=True,
                                         max_tile_n=2048,
                                         vmem_budget_bytes=20 * 1024 * 1024):
    """Pallas version of multiclass_cross_entropy_loss: returns lossmap [B, H, W] (f32)."""
    x, t, B, C, H, W, HW, tile_n, num_tiles = _prep(
        logits_nchw, target_bhw, num_classes, focal_gamma, max_tile_n, vmem_budget_bytes)

    kernel = functools.partial(
        _mce_lossmap_kernel,
        pos_neg_rate=float(pos_neg_rate),
        focal_gamma=focal_gamma,
        ignore_index=None if ignore_index is None else int(ignore_index),
        input_logits=bool(input_logits),
    )

    lossmap = pl.pallas_call(
        kernel,
        out_shape=jax.ShapeDtypeStruct((B, 1, HW), jnp.float32),
        grid_spec=pltpu.PrefetchScalarGridSpec(
            num_scalar_prefetch=0,
            grid=(B, num_tiles),
            in_specs=[
                pl.BlockSpec((None, C, tile_n), lambda b, i: (b, 0, i)),
                pl.BlockSpec((None, 1, tile_n), lambda b, i: (b, 0, i)),
            ],
            out_specs=pl.BlockSpec((None, 1, tile_n), lambda b, i: (b, 0, i)),
        ),
        compiler_params=pltpu.CompilerParams(
            dimension_semantics=("parallel", "parallel"),
            vmem_limit_bytes=_VMEM_LIMIT_BYTES,
        ),
    )(x, t)

    return lossmap.reshape(B, H, W)


def mce_loss(logits_nchw, target_bhw, num_classes=None, ignore_index=None,
             pos_neg_rate=0.5, focal_gamma=None, input_logits=True,
             fused_mean=True, max_tile_n=2048,
             vmem_budget_bytes=20 * 1024 * 1024):
    """Equivalent of MCELoss.forward: mean of the per-pixel lossmap (over all pixels)."""
    if not fused_mean:
        lossmap = multiclass_cross_entropy_loss_pallas(
            logits_nchw, target_bhw, num_classes=num_classes, ignore_index=ignore_index,
            pos_neg_rate=pos_neg_rate, focal_gamma=focal_gamma, input_logits=input_logits,
            max_tile_n=max_tile_n, vmem_budget_bytes=vmem_budget_bytes)
        return jnp.mean(lossmap)

    x, t, B, C, H, W, HW, tile_n, num_tiles = _prep(
        logits_nchw, target_bhw, num_classes, focal_gamma, max_tile_n, vmem_budget_bytes)

    kernel = functools.partial(
        _mce_sum_kernel,
        hw=HW, tile_n=tile_n,
        pos_neg_rate=float(pos_neg_rate),
        focal_gamma=focal_gamma,
        ignore_index=None if ignore_index is None else int(ignore_index),
        input_logits=bool(input_logits),
    )

    # Resident accumulator output block (same block index for every grid step), so both
    # grid axes are "arbitrary"; partial sums never round-trip through HBM.
    partial = pl.pallas_call(
        kernel,
        out_shape=jax.ShapeDtypeStruct((1, tile_n), jnp.float32),
        grid_spec=pltpu.PrefetchScalarGridSpec(
            num_scalar_prefetch=0,
            grid=(B, num_tiles),
            in_specs=[
                pl.BlockSpec((None, C, tile_n), lambda b, i: (b, 0, i)),
                pl.BlockSpec((None, 1, tile_n), lambda b, i: (b, 0, i)),
            ],
            out_specs=pl.BlockSpec((1, tile_n), lambda b, i: (0, 0)),
        ),
        compiler_params=pltpu.CompilerParams(
            dimension_semantics=("arbitrary", "arbitrary"),
            vmem_limit_bytes=_VMEM_LIMIT_BYTES,
        ),
    )(x, t)

    return jnp.sum(partial) / jnp.float32(B * HW)


def _reference_lossmap(logits, target, num_classes, ignore_index=None,
                       pos_neg_rate=0.5, focal_gamma=None, input_logits=True):
    """Pure-JAX reference mirroring the PyTorch code (for sanity checking)."""
    B, C, H, W = logits.shape
    pred = jnp.transpose(logits, (0, 2, 3, 1)).reshape(-1, C).astype(jnp.float32)
    if input_logits:
        pred = jax.nn.softmax(pred, axis=1)
    tgt = target.reshape(-1)
    ignore_mask = None
    if ignore_index is not None:
        ignore_mask = tgt == ignore_index
        tgt = jnp.where(ignore_mask, 0, tgt)
    onehot = jax.nn.one_hot(tgt, num_classes, dtype=jnp.float32)
    log_p = jnp.maximum(jnp.log(pred), _LOG_CLAMP)
    log_1mp = jnp.maximum(jnp.log(1.0 - pred), _LOG_CLAMP)
    bce = -(onehot * log_p + (1.0 - onehot) * log_1mp)
    w = pos_neg_rate * onehot + (1.0 - pos_neg_rate) * (1.0 - onehot)
    mapc = bce * w
    if focal_gamma is not None and focal_gamma != 0:
        pt = pred * (1.0 - onehot) + (1.0 - pred) * onehot
        mapc = mapc * jnp.power(pt, focal_gamma)
    lossmap = jnp.sum(mapc, axis=-1)
    if ignore_mask is not None:
        lossmap = jnp.where(ignore_mask, 0.0, lossmap)
    return lossmap.reshape(B, H, W)


if __name__ == "__main__":
    key = jax.random.PRNGKey(0)
    k1, k2, k3, k4 = jax.random.split(key, 4)

    # Config A: default MCELoss (pos_neg_rate=0.5, no ignore_index, no focal), f32 logits.
    B, C, H, W = 2, 4, 16, 16
    logits = jax.random.normal(k1, (B, C, H, W), dtype=jnp.float32)
    target = jax.random.randint(k2, (B, H, W), 0, C, dtype=jnp.int32)

    lossmap = multiclass_cross_entropy_loss_pallas(logits, target, num_classes=C)
    loss_fused = mce_loss(logits, target, num_classes=C, fused_mean=True)
    loss_plain = mce_loss(logits, target, num_classes=C, fused_mean=False)
    jax.block_until_ready((lossmap, loss_fused, loss_plain))

    ref_map = _reference_lossmap(logits, target, C)
    assert jnp.allclose(lossmap, ref_map, rtol=1e-5, atol=1e-5)
    assert jnp.allclose(loss_fused, jnp.mean(ref_map), rtol=1e-5, atol=1e-5)
    assert jnp.allclose(loss_plain, jnp.mean(ref_map), rtol=1e-5, atol=1e-5)

    # Config B: ignore_index + focal_gamma branches.
    lossmap_f = multiclass_cross_entropy_loss_pallas(
        logits, target, num_classes=C, ignore_index=0, focal_gamma=2.0)
    loss_f = mce_loss(logits, target, num_classes=C, ignore_index=0, focal_gamma=2.0)
    jax.block_until_ready((lossmap_f, loss_f))
    ref_map_f = _reference_lossmap(logits, target, C, ignore_index=0, focal_gamma=2.0)
    assert jnp.allclose(lossmap_f, ref_map_f, rtol=1e-5, atol=1e-5)
    assert jnp.allclose(loss_f, jnp.mean(ref_map_f), rtol=1e-5, atol=1e-5)

    # Config C: ragged spatial size (H*W not a multiple of 128), odd C, bf16 logits
    # (exercises the partial-last-block path that replaced the wrapper-side jnp.pad).
    B2, C2, H2, W2 = 2, 5, 10, 10
    logits2 = jax.random.normal(k3, (B2, C2, H2, W2), dtype=jnp.bfloat16)
    target2 = jax.random.randint(k4, (B2, H2, W2), 0, C2, dtype=jnp.int32)
    lossmap2 = multiclass_cross_entropy_loss_pallas(logits2, target2, num_classes=C2)
    loss2 = mce_loss(logits2, target2, num_classes=C2)
    jax.block_until_ready((lossmap2, loss2))
    ref_map2 = _reference_lossmap(logits2, target2, C2)
    assert jnp.allclose(lossmap2, ref_map2, rtol=1e-4, atol=1e-5)
    assert jnp.allclose(loss2, jnp.mean(ref_map2), rtol=1e-4, atol=1e-5)

    print("KERNEL_OK")
</pallas_src>

<mosaic_0001>
module attributes {stable_mosaic.version = 11 : i64} {
  func.func @_mce_lossmap_kernel(%arg0: i32, %arg1: i32, %arg2: memref<1x4x128xf32, #tpu.memory_space<vmem>>, %arg3: memref<1x1x128xi32, #tpu.memory_space<vmem>>, %arg4: memref<1x1x128xf32, #tpu.memory_space<vmem>>) attributes {dimension_semantics = [#tpu.dimension_semantics<parallel>, #tpu.dimension_semantics<parallel>], iteration_bounds = array<i64: 2, 2>, scalar_prefetch = 0 : i64, scratch_operands = 0 : i64, tpu.core_type = #tpu.core_type<tc>, window_params = [{transform_indices = @transform_0, window_bounds = array<i64: 1, 4, 128>}, {transform_indices = @transform_1, window_bounds = array<i64: 1, 1, 128>}, {transform_indices = @transform_2, window_bounds = array<i64: 1, 1, 128>}]} {
    %c0 = arith.constant 0 : index
    %c0_0 = arith.constant 0 : index
    %c0_1 = arith.constant 0 : index
    %0 = vector.load %arg2[%c0, %c0_0, %c0_1] : memref<1x4x128xf32, #tpu.memory_space<vmem>>, vector<1x4x128xf32>
    %1 = vector.shape_cast %0 : vector<1x4x128xf32> to vector<4x128xf32>
    %c0_2 = arith.constant 0 : index
    %c0_3 = arith.constant 0 : index
    %c0_4 = arith.constant 0 : index
    %2 = vector.load %arg3[%c0_2, %c0_3, %c0_4] : memref<1x1x128xi32, #tpu.memory_space<vmem>>, vector<1x1x128xi32>
    %3 = vector.shape_cast %2 : vector<1x1x128xi32> to vector<1x128xi32>
    %4 = tpu.iota {dimensions = array<i32: 0>} : vector<4x128xi32>
    %5 = vector.broadcast %3 : vector<1x128xi32> to vector<4x128xi32>
    %6 = arith.cmpi eq, %4, %5 : vector<4x128xi32>
    %cst = arith.constant dense<0xFF800000> : vector<128xf32>
    %7 = vector.multi_reduction <maximumf>, %1, %cst [0] : vector<4x128xf32> to vector<128xf32>
    %8 = vector.shape_cast %7 : vector<128xf32> to vector<1x128xf32>
    %9 = vector.broadcast %8 : vector<1x128xf32> to vector<4x128xf32>
    %10 = arith.subf %1, %9 : vector<4x128xf32>
    %11 = math.exp %10 : vector<4x128xf32>
    %cst_5 = arith.constant dense<0.000000e+00> : vector<128xf32>
    %12 = vector.multi_reduction <add>, %11, %cst_5 [0] : vector<4x128xf32> to vector<128xf32>
    %13 = vector.shape_cast %12 : vector<128xf32> to vector<1x128xf32>
    %cst_6 = arith.constant 1.000000e+00 : f32
    %14 = vector.broadcast %cst_6 : f32 to vector<1x128xf32>
    %15 = arith.divf %14, %13 : vector<1x128xf32>
    %16 = math.log %13 : vector<1x128xf32>
    %17 = vector.broadcast %15 : vector<1x128xf32> to vector<4x128xf32>
    %18 = arith.mulf %11, %17 : vector<4x128xf32>
    %cst_7 = arith.constant 0.000000e+00 : f32
    %19 = vector.broadcast %cst_7 : f32 to vector<4x128xf32>
    %20 = arith.select %6, %10, %19 : vector<4x128xi1>, vector<4x128xf32>
    %cst_8 = arith.constant dense<0.000000e+00> : vector<128xf32>
    %21 = vector.multi_reduction <add>, %20, %cst_8 [0] : vector<4x128xf32> to vector<128xf32>
    %22 = vector.shape_cast %21 : vector<128xf32> to vector<1x128xf32>
    %23 = arith.subf %22, %16 : vector<1x128xf32>
    %cst_9 = arith.constant -1.000000e+02 : f32
    %24 = vector.broadcast %cst_9 : f32 to vector<1x128xf32>
    %25 = arith.maximumf %23, %24 : vector<1x128xf32>
    %cst_10 = arith.constant 1.000000e+00 : f32
    %26 = vector.broadcast %cst_10 : f32 to vector<4x128xf32>
    %27 = arith.subf %26, %18 : vector<4x128xf32>
    %28 = math.log %27 : vector<4x128xf32>
    %cst_11 = arith.constant -1.000000e+02 : f32
    %29 = vector.broadcast %cst_11 : f32 to vector<4x128xf32>
    %30 = arith.maximumf %28, %29 : vector<4x128xf32>
    %cst_12 = arith.constant dense<0.000000e+00> : vector<128xf32>
    %31 = vector.multi_reduction <add>, %30, %cst_12 [0] : vector<4x128xf32> to vector<128xf32>
    %32 = vector.shape_cast %31 : vector<128xf32> to vector<1x128xf32>
    %cst_13 = arith.constant 0.000000e+00 : f32
    %33 = vector.broadcast %cst_13 : f32 to vector<4x128xf32>
    %34 = arith.select %6, %30, %33 : vector<4x128xi1>, vector<4x128xf32>
    %cst_14 = arith.constant dense<0.000000e+00> : vector<128xf32>
    %35 = vector.multi_reduction <add>, %34, %cst_14 [0] : vector<4x128xf32> to vector<128xf32>
    %36 = vector.shape_cast %35 : vector<128xf32> to vector<1x128xf32>
    %cst_15 = arith.constant 1.000000e+00 : f32
    %cst_16 = arith.constant 5.000000e-01 : f32
    %37 = arith.subf %cst_15, %cst_16 : f32
    %38 = arith.subf %36, %32 : vector<1x128xf32>
    %39 = vector.broadcast %37 : f32 to vector<1x128xf32>
    %40 = arith.mulf %39, %38 : vector<1x128xf32>
    %cst_17 = arith.constant 5.000000e-01 : f32
    %41 = vector.broadcast %cst_17 : f32 to vector<1x128xf32>
    %42 = arith.mulf %41, %25 : vector<1x128xf32>
    %43 = arith.subf %40, %42 : vector<1x128xf32>
    %c0_18 = arith.constant 0 : index
    %c0_19 = arith.constant 0 : index
    %c0_20 = arith.constant 0 : index
    %44 = vector.load %arg4[%c0_18, %c0_19, %c0_20] : memref<1x1x128xf32, #tpu.memory_space<vmem>>, vector<1x1x128xf32>
    %45 = vector.shape_cast %44 : vector<1x1x128xf32> to vector<1x128xf32>
    %46 = vector.shape_cast %43 : vector<1x128xf32> to vector<1x1x128xf32>
    tpu.vector_store %arg4[%c0_18, %c0_19, %c0_20], %46 {strides = array<i32>} : memref<1x1x128xf32, #tpu.memory_space<vmem>>, vector<1x1x128xf32>,
    return
  }
  func.func @transform_0(%arg0: i32, %arg1: i32) -> (i32, i32, i32) {
    %c0_i32 = arith.constant 0 : i32
    %c0_i32_0 = arith.constant 0 : i32
    return %arg0, %c0_i32, %arg1 : i32, i32, i32
  }
  func.func @transform_1(%arg0: i32, %arg1: i32) -> (i32, i32, i32) {
    %c0_i32 = arith.constant 0 : i32
    %c0_i32_0 = arith.constant 0 : i32
    return %arg0, %c0_i32, %arg1 : i32, i32, i32
  }
  func.func @transform_2(%arg0: i32, %arg1: i32) -> (i32, i32, i32) {
    %c0_i32 = arith.constant 0 : i32
    %c0_i32_0 = arith.constant 0 : i32
    return %arg0, %c0_i32, %arg1 : i32, i32, i32
  }
}

</mosaic_0001>

<bundles_post_ra>
// kernel: tpu_custom_call.1
= control target key start
LH: loop header
LB: loop body
LE: loop exit
PB: predicated region body
PF: predicated region fallthrough
CT: control target
= control target key end

     0   :  { %7 = vsyncpa [#allocation3], 0  ;;  %s935_s0 = inlined_call_operand.hbm [shape: f32[2,4,256], index: 0, kind: input, shape index: {}]   ;;  %s936_s1 = inlined_call_operand.hbm [shape: s32[2,1,256], index: 1, kind: input, shape index: {}]   ;;  %s937_s2 = inlined_call_operand.hbm [shape: f32[2,1,256], index: 2, kind: output, shape index: {}]  }
   0x1   :  { %9 = vsyncpa [#allocation3 + $0x1], 0 }
   0x2   :  { %10 = vsyncpa [#allocation6], 0 }
   0x3   :  { %12 = vsyncpa [#allocation6 + $0x1], 0 }
   0x4   :  { %13 = vsyncpa [#allocation4], 0 }
   0x5   :  { %15 = vsyncpa [#allocation4 + $0x1], 0  ;;  %s687_s9 = smov 0   ;;  %s689_s10 = smov 0  }
   0x6   :  { %s691_s11 = smov 0   ;;  %s693_s12 = smov 0  }
   0x7   :  { %s695_s13 = smov 0   ;;  %s697_s14 = smov 0  }
   0x8   :  { %s699_s15 = smov 0   ;;  %s701_s16 = smov 0  }
   0x9 LB: > { %s398_s17 = sadd.s32 4294967295, %s667_s16   ;;  %s399_s18 = sadd.s32 4294967294, %s667_s16   ;;  %s667_s16 = sphi %s701_s16, %s21_s16   ;;  %s663_s15 = sphi %s699_s15, %s958_s15   ;;  %s659_s14 = sphi %s697_s14, %s957_s14   ;;  %s655_s13 = sphi %s695_s13, %s956_s13   ;;  %s651_s12 = sphi %s693_s12, %s955_s12   ;;  %s647_s11 = sphi %s691_s11, %s954_s11   ;;  %s643_s10 = sphi %s689_s10, %s953_s10   ;;  %s639_s9 = sphi %s687_s9, %s952_s9  }
   0xa   : > { %s30_s19 = sadd.s32 1, %s659_s14  ;;  %s33_s20 = sadd.s32 1, %s663_s15 }
   0xb   : > { %p31_p0 = scmp.ge.s32.totalorder %s30_s19, 2  ;;  %s42_s21 = sadd.s32 1, %s647_s11 }
   0xc   : > { %p49_p1 = scmp.ne.s32.totalorder %s647_s11, %s643_s10  ;;  %p50_p2 = scmp.eq.s32.totalorder %s667_s16, 0 }
   0xd   : > { %s960_s19 = smov (%p31_p0, %s30_s19), 0  ;;  %s962_s20 = smov (!%p31_p0, %s33_s20), %s663_s15 }
   0xe   : > { %s38_s22 = ssub.s32 %s659_s14, %s960_s19  ;;  %p740_p3 = por %p50_p2, %p49_p1 }
   0xf   : > { %p35_p4 = scmp.ge.s32.totalorder %s962_s20, 2  ;;  %p55_p5 = scmp.ne.s32.totalorder %s643_s10, %s639_s9 }
  0x10   : > { %p56_p6 = scmp.eq.s32.totalorder %s398_s17, 0  ;;  %p109_p7 = scmp.eq.s32.totalorder %s398_s17, 3 }
  0x11   : > { %s964_s20 = smov (%p35_p4, %s962_s20), 0  ;;  %p115_p10 = scmp.eq.s32.totalorder %s399_s18, 3 }
  0x12   : > { %p748_p8 = por %p56_p6, %p55_p5  ;;  %p752_p9 = por %p109_p7, %p49_p1 }
  0x13   : > { %s37_s26 = ssub.s32 %s663_s15, %s964_s20  ;;  %p758_p12 = por %p115_p10, %p55_p5 }
  0x14   : > { %s941_s24 = scalar_select %p748_p8, 1, 0 }
  0x15   : > { %s942_s25 = scalar_select %p752_p9, 1, 0 }
  0x16   : > { %s39_s27 = sor.u32 %s38_s22, %s37_s26  ;;  %p431_p13 = scmp.lt.s32.totalorder %s667_s16, 4 }
  0x17   : > { %p40_p11 = scmp.eq.s32.totalorder %s39_s27, 0  ;;  %s764_s29 = sand.u32 1, %s647_s11  }
  0x18   : > { %s943_s28 = scalar_select %p758_p12, 1, 0 }
  0x19   : > { %s767_s30 = scalar_select %p40_p11, %s647_s11, %s42_s21  }
  0x1a   : > { %s402_s3 = sshll.u32 %s764_s29, 2  ;;  %s403_s4 = sshll.u32 %s663_s15, 1 }
  0x1b   : > { %s772_s5 = sadd.s32 %s659_s14, %s403_s4  ;;  %s139_s6 = scalar_lea.vmem [#allocation2], %s402_s3 }
  0x1c   : > { %s148_s7 = sshll.u32 %s139_s6, 4  ;;  %s404_s8 = sshll.u32 %s772_s5, 6  ;;  %s775_s7 = int_to_ptr.vmem [resolvable:$true] %s148_s7 }
  0x1d   : > { %s780_s22 = scalar_lea.hbm %s935_s0, %s404_s8  ;;  %p784_p0 = pnand %p431_p13, %p740_p3 }
  0x1e   : > { %s136_s26 = scalar_lea.sflag [#allocation3], %s764_s29  ;;  %s505_s27 = scalar_lea.hbm %s780_s22, 64 }
  0x1f   : > { %p506_p4 = scmp.ne.s32.totalorder %s780_s22, %s505_s27  ;;  %p507_p5 = pneg %p784_p0 }
  0x20   : > { %s510_s4 = scalar_lea.hbm %s935_s0, 256  ;;  %p511_p3 = scmp.lt.u32.totalorder %s780_s22, %s935_s0 }
  0x21   : > { %p508_p6 = pnand %p507_p5, %p506_p4  ;;  %p512_p10 = scmp.lt.u32.totalorder %s510_s4, %s505_s27 }
  0x22   : > { %p514_p13 = scmp.lt.u32.totalorder %s505_s27, %s780_s22 }
  0x23   : > { %p509_p7 = pneg %p508_p6  ;;  %p513_p11 = por %p512_p10, %p511_p3 }
  0x25   : > { %p515_p1 = por %p514_p13, %p513_p11 }
  0x27   : > { %p516_p2 = pnand %p515_p1, %p509_p7 }
  0x29   : > { %519 = shalt.err (!%p516_p2)
}
  0x2a   : > { %s520_s17 = scalar_lea.vmem %s775_s7, 64  ;;  %s669_s18 = smov [#allocation2]  }
  0x2b   : > { %p521_p4 = scmp.ne.s32.totalorder %s775_s7, %s520_s17  ;;  %s525_s23 = sshll.u32 %s669_s18, 4  ;;  %s526_s23 = int_to_ptr.vmem [resolvable:$false] %s525_s23 }
  0x2c   : > { %s527_s3 = scalar_lea.vmem %s526_s23, 128  ;;  %p528_p9 = scmp.lt.s32.totalorder %s775_s7, %s526_s23 }
  0x2d   : > { %p523_p6 = pnand %p521_p4, %p507_p5  ;;  %p529_p3 = scmp.lt.s32.totalorder %s527_s3, %s520_s17 }
  0x2f   : > { %p524_p12 = pneg %p523_p6  ;;  %p530_p10 = por %p529_p3, %p528_p9 }
  0x31   : > { %p531_p11 = pnand %p530_p10, %p524_p12 }
  0x33   : > { %534 = shalt.err (!%p531_p11)
}
  0x34   : > { %423 = dma.hbm_to_vmem [thread:$0]  (!%p784_p0), %s780_s22, 64, %s775_s7, %s136_s26  }
  0x35   : > { %p945_p1 = scmp.lt.s32.totalorder %s667_s16, 5  ;;  %p946_p2 = scmp.ge.s32.totalorder %s667_s16, 1 }
  0x36   : > { %s406_s4 = sshll.u32 %s772_s5, 4  ;;  %s158_s6 = scalar_lea.vmem [#allocation5], %s764_s29 }
  0x37   : > { %p820_p7 = pnand %p946_p2, %p945_p1  ;;  %s167_s8 = sshll.u32 %s158_s6, 4  ;;  %s168_s8 = int_to_ptr.vmem [resolvable:$true] %s167_s8 }
  0x38   : > { %s829_s23 = scalar_lea.hbm %s936_s1, %s406_s4  ;;  %s156_s7 = scalar_lea.sflag [#allocation6], %s764_s29 }
  0x39   : > { %s947_s27 = scalar_select %p820_p7, 1, 0 }
  0x3a   : > { %s535_s22 = scalar_lea.hbm %s829_s23, 16  ;;  %s540_s3 = scalar_lea.hbm %s936_s1, 64 }
  0x3b   : > { %p536_p9 = scmp.ne.s32.totalorder %s829_s23, %s535_s22  ;;  %p541_p4 = scmp.lt.u32.totalorder %s829_s23, %s936_s1 }
  0x3c   : > { %p542_p6 = scmp.lt.u32.totalorder %s540_s3, %s535_s22  ;;  %p544_p10 = scmp.lt.u32.totalorder %s535_s22, %s829_s23 }
  0x3d   : > { %p538_p12 = pnand %p536_p9, %p507_p5 }
  0x3e   : > { %p543_p3 = por %p542_p6, %p541_p4 }
  0x3f   : > { %p539_p13 = pneg %p538_p12 }
  0x40   : > { %p545_p11 = por %p544_p10, %p543_p3 }
  0x42   : > { %p546_p1 = pnand %p545_p11, %p539_p13 }
  0x44   : > { %549 = shalt.err (!%p546_p1)
}
  0x45   : > { %s550_s29 = scalar_lea.vmem %s168_s8, 16  ;;  %s670_s4 = smov [#allocation5]  }
  0x46   : > { %p551_p2 = scmp.ne.s32.totalorder %s168_s8, %s550_s29  ;;  %s555_s18 = sshll.u32 %s670_s4, 4  ;;  %s556_s18 = int_to_ptr.vmem [resolvable:$false] %s555_s18 }
  0x47   : > { %s557_s5 = scalar_lea.vmem %s556_s18, 32  ;;  %p558_p8 = scmp.lt.s32.totalorder %s168_s8, %s556_s18 }
  0x48   : > { %p553_p9 = pnand %p551_p2, %p507_p5  ;;  %p559_p7 = scmp.lt.s32.totalorder %s557_s5, %s550_s29 }
  0x4a   : > { %p554_p12 = pneg %p553_p9  ;;  %p560_p4 = por %p559_p7, %p558_p8 }
  0x4c   : > { %p561_p6 = pnand %p560_p4, %p554_p12 }
  0x4e   : > { %564 = shalt.err (!%p561_p6)
}
  0x4f   : > { %426 = dma.hbm_to_vmem [thread:$0]  (!%p784_p0), %s829_s23, 16, %s168_s8, %s156_s7  }
  0x50   : > { %p948_p13 = scmp.ne.s32.totalorder %s947_s27, 0 }
  0x51   : > { %s854_s22 = sand.u32 (!%p948_p13), 1, %s643_s10   ;;  %p949_p5 = scmp.ne.s32.totalorder (!%p948_p13), %s941_s24, 0 }
  0x52   : > { %176 = sbr.rel (%p948_p13) target bundleno = 198 (0xc6), region = 28  ;;  %s408_s26 = sshll.u32 (!%p948_p13), %s854_s22, 2 }
  0x53   : > { %s179_s3 = scalar_lea.sflag (!%p948_p13), [#allocation3], %s854_s22  ;;  %s182_s6 = scalar_lea.vmem (!%p948_p13), [#allocation2], %s408_s26 }
  0x59   : > { %626 = dma.done.wait (%p949_p5), %s179_s3, 64  }
  0x5a   : > { %628 = vsyncadd (%p949_p5), %s179_s3, 4294967232  ;;  %s188_s21 = scalar_lea.sflag [#allocation6], %s854_s22  ;;  %s190_s27 = scalar_lea.vmem [#allocation5], %s854_s22 }
  0x5b   : > { %630 = dma.done.wait (%p949_p5), %s188_s21, 16  }
  0x5c   : > { %632 = vsyncadd (%p949_p5), %s188_s21, 4294967280  ;;  %vm223_vm0 = vcmask 1043456   ;;  %v214_v0 = vld [vmem:[%s182_s6] sm:$0xf]  ;;  %v216_v16 = vlaneseq  ;;  %s410_s24 = sshll.u32 %s655_s13, 1  ;;  %s213_s23 = scalar_lea.vmem [#allocation7], %s854_s22 }
  0x5d   : > { %v224_v1 = vsel %vm223_vm0, %v214_v0, -inf  ;;  %v409_v20 = vld [vmem:[%s190_s27] ss:$0 sm:$0xff]  ;;  %s291_s8 = sadd.s32 %s651_s12, %s410_s24  ;;  %s295_s7 = sshll.u32 %s213_s23, 4  ;;  %s878_s7 = int_to_ptr.vmem [resolvable:$true] %s295_s7 }
  0x5e   : > { %v225_v2 = vrot.slane %v224_v1, 4  ;;  %v217_v19 = vshrl.u32 %v216_v16, 7  ;;  %s411_s17 = sshll.u32 %s291_s8, 4  ;;  %s281_s18 = scalar_lea.sflag [#allocation4], %s854_s22 }
  0x5f   : > { %s883_s13 = scalar_lea.hbm %s937_s2, %s411_s17  ;;  %s565_s12 = scalar_lea.vmem %s878_s7, 16 }
  0x60   : > { %v226_v3 = vmax.f32 %v224_v1, %v225_v2  ;;  %vm222_vm1 = vcmp.eq.s32.totalorder %v217_v19, %v409_v20  ;;  %p566_p8 = scmp.ne.s32.totalorder %s878_s7, %s565_s12  ;;  %p950_p0 = scmp.ne.s32.totalorder %s942_s25, 0 }
  0x61   : > { %s671_s5 = smov [#allocation7]  }
  0x62   : > { %v227_v4 = vrot.slane %v226_v3, 2  ;;  %p567_p7 = pnand %p566_p8, %p950_p0  ;;  %s569_s26 = sshll.u32 %s671_s5, 4  ;;  %s570_s26 = int_to_ptr.vmem [resolvable:$false] %s569_s26 }
  0x63   : > { %s571_s3 = scalar_lea.vmem %s570_s26, 32  ;;  %p572_p10 = scmp.lt.s32.totalorder %s878_s7, %s570_s26 }
  0x64   : > { %v228_v5 = vmax.f32 %v226_v3, %v227_v4  ;;  %p568_p3 = pneg %p567_p7  ;;  %p573_p11 = scmp.lt.s32.totalorder %s571_s3, %s565_s12 }
  0x66   : > { %v229_v6 = vrot.slane %v228_v5, 1  ;;  %p574_p1 = por %p573_p11, %p572_p10 }
  0x68   : > { %v230_v7 = vmax.f32 %v228_v5, %v229_v6  ;;  %p575_p2 = pnand %p574_p1, %p568_p3 }
  0x6a   : > { %v231_v8 = vsub.f32 %v214_v0, %v230_v7 }
  0x6c   : > { %v232_v9 = vmul.f32 1.442695, %v231_v8  ;;  %v246_v21 = vsel %vm222_vm1, %v231_v8, 0.0 }
  0x6d   : > { %v247_v22 = vsel %vm223_vm0, %v246_v21, 0.0 }
  0x6e   : > { %497 = vpow2.f32 %v232_v9  ;;  %v248_v25 = vrot.slane %v247_v22, 4 }
  0x70   : > { %v249_v27 = vadd.f32 %v248_v25, %v247_v22 }
  0x72   : > { %v250_v28 = vrot.slane %v249_v27, 2 }
  0x74   : > { %v251_v29 = vadd.f32 %v250_v28, %v249_v27 }
  0x76   : > { %v252_v32 = vrot.slane %v251_v29, 1 }
  0x78   : > { %v498_v10 = vpop.eup %497  ;;  %v253_v40 = vadd.f32 %v252_v32, %v251_v29 }
  0x79   : > { %v234_v11 = vsel %vm223_vm0, %v498_v10, 0.0 }
  0x7a   : > { %v235_v12 = vrot.slane %v234_v11, 4 }
  0x7c   : > { %v236_v13 = vadd.f32 %v235_v12, %v234_v11 }
  0x7e   : > { %v237_v14 = vrot.slane %v236_v13, 2 }
  0x80   : > { %v238_v15 = vadd.f32 %v237_v14, %v236_v13 }
  0x82   : > { %v239_v17 = vrot.slane %v238_v15, 1 }
  0x84   : > { %v240_v18 = vadd.f32 %v239_v17, %v238_v15 }
  0x86   : > { %499 = vrcp.f32 %v240_v18 }
  0x90   : > { %v500_v23 = vpop.eup %499 }
  0x91   : > { %v245_v24 = vmul.f32 %v500_v23, %v498_v10 }
  0x93   : > { %v256_v26 = vsub.f32 1.0, %v245_v24 }
  0x95   : > { %501 = vlog2.f32 %v256_v26 }
  0x96   : > { %503 = vlog2.f32 %v240_v18 }
  0x9f   : > { %v502_v30 = vpop.eup %501 }
  0xa0   : > { %v258_v31 = vmul.f32 0.6931472, %v502_v30  ;;  %v504_v34 = vpop.eup %503 }
  0xa1   : > { %v244_v39 = vmul.f32 0.6931472, %v504_v34 }
  0xa2   : > { %v259_v33 = vmax.f32 %v258_v31, -100.0 }
  0xa3   : > { %v254_v45 = vsub.f32 %v253_v40, %v244_v39 }
  0xa4   : > { %v260_v35 = vsel %vm223_vm0, %v259_v33, 0.0  ;;  %v267_v36 = vsel %vm222_vm1, %v259_v33, 0.0 }
  0xa5   : > { %v261_v37 = vrot.slane %v260_v35, 4  ;;  %v268_v38 = vsel %vm223_vm0, %v267_v36, 0.0  ;;  %v255_v50 = vmax.f32 %v254_v45, -100.0 }
  0xa6   : > { %v269_v41 = vrot.slane %v268_v38, 4 }
  0xa7   : > { %v262_v42 = vadd.f32 %v261_v37, %v260_v35  ;;  %v277_v55 = vmul.f32 0.5, %v255_v50 }
  0xa8   : > { %v270_v43 = vadd.f32 %v269_v41, %v268_v38 }
  0xa9   : > { %v263_v44 = vrot.slane %v262_v42, 2 }
  0xaa   : > { %v271_v46 = vrot.slane %v270_v43, 2 }
  0xab   : > { %v264_v47 = vadd.f32 %v263_v44, %v262_v42 }
  0xac   : > { %v272_v48 = vadd.f32 %v271_v46, %v270_v43 }
  0xad   : > { %v265_v49 = vrot.slane %v264_v47, 1 }
  0xae   : > { %v273_v51 = vrot.slane %v272_v48, 1 }
  0xaf   : > { %v266_v52 = vadd.f32 %v265_v49, %v264_v47 }
  0xb0   : > { %v274_v53 = vadd.f32 %v273_v51, %v272_v48 }
  0xb2   : > { %v275_v54 = vsub.f32 %v274_v53, %v266_v52 }
  0xb4   : > { %v276_v56 = vmul.f32 0.5, %v275_v54 }
  0xb6   : > { %v278_v57 = vsub.f32 %v276_v56, %v277_v55 }
  0xb8   : > { %279 = vst [vmem:[%s213_s23] sm:$0x1] %v278_v57 }
  0xb9   : > { %578 = shalt.err (!%p575_p2)
}
  0xba   : > { %s579_s22 = scalar_lea.hbm %s883_s13, 16  ;;  %s583_s27 = scalar_lea.hbm %s937_s2, 64 }
  0xbb   : > { %p580_p9 = scmp.ne.s32.totalorder %s883_s13, %s579_s22  ;;  %p584_p6 = scmp.lt.u32.totalorder %s883_s13, %s937_s2 }
  0xbc   : > { %p585_p13 = scmp.lt.u32.totalorder %s583_s27, %s579_s22  ;;  %p587_p8 = scmp.lt.u32.totalorder %s579_s22, %s883_s13 }
  0xbd   : > { %p581_p12 = pnand %p580_p9, %p950_p0 }
  0xbe   : > { %p586_p5 = por %p585_p13, %p584_p6 }
  0xbf   : > { %p582_p4 = pneg %p581_p12 }
  0xc0   : > { %p588_p7 = por %p587_p8, %p586_p5 }
  0xc2   : > { %p589_p3 = pnand %p588_p7, %p582_p4 }
  0xc4   : > { %592 = shalt.err (!%p589_p3)
}
  0xc5   : > { %418 = dma.vmem_to_hbm [thread:$0]  (%p950_p0), %s878_s7, 16, %s883_s13, %s281_s18  }
  0xc6 PF: > { %p432_p10 = scmp.ge.s32.totalorder %s667_s16, 2  ;;  %s307_s23 = sand.u32 1, %s639_s9  }
  0xc7   : > { %p951_p11 = scmp.ne.s32.totalorder %s943_s28, 0  ;;  %s308_s17 = scalar_lea.sflag [#allocation4], %s307_s23 }
  0xc9   : > { %p428_p1 = pnand %p432_p10, %p951_p11 }
  0xcb   : > { %634 = dma.done.wait (!%p428_p1), %s308_s17, 16  }
  0xcc   : > { %636 = vsyncadd (!%p428_p1), %s308_s17, 4294967280  ;;  %s21_s16 = sadd.s32 1, %s667_s16   ;;  %s952_s9 = smov %s643_s10 }
  0xcd   : > { %p18_p2 = scmp.ge.s32.totalorder %s21_s16, 6   ;;  %s953_s10 = smov %s647_s11 }
  0xce   : > { %s954_s11 = smov %s767_s30  ;;  %s955_s12 = smov %s659_s14 }
  0xcf   : > { %s956_s13 = smov %s663_s15  ;;  %s957_s14 = smov %s960_s19 }
  0xd0   : > { %s958_s15 = smov %s964_s20  ;;  %20 = sbr.rel (!%p18_p2) target bundleno = 9 (0x9), region = 86 }
  0xd7   :  { %312 = vsyncpa [#allocation3], 1 }
  0xd8   :  { %314 = vsyncpa [#allocation3 + $0x1], 1 }
  0xd9   :  { %315 = vsyncpa [#allocation6], 1 }
  0xda   :  { %317 = vsyncpa [#allocation6 + $0x1], 1 }
  0xdb   :  { %318 = vsyncpa [#allocation4], 1 }
  0xdc   :  { %320 = vsyncpa [#allocation4 + $0x1], 1 }

</bundles_post_ra>
